<compile_context>
chip_gen: v5e
topology: v5e:2x2
jax: 0.10.0
libtpu: 0.0.40
codegen_flags: <defaults>
</compile_context>

<pallas_src>
import jax
import jax.numpy as jnp
from jax.experimental import pallas as pl
from jax.experimental.pallas import tpu as pltpu


def _make_maxout_kernel(tr, resident_scales):
    def kernel(x_ref, pos_ref, neg_ref, o_ref):
        x = x_ref[...]                                        # (tr, tl)
        if resident_scales:
            # Scales live fully in VMEM; pick this row-block's slice.
            r0 = pl.multiple_of(pl.program_id(0) * tr, tr)
            pos = pos_ref[pl.ds(r0, tr), :]                   # (tr, 1), f32
            neg = neg_ref[pl.ds(r0, tr), :]
        else:
            pos = pos_ref[...]                                # streamed (tr, 1)
            neg = neg_ref[...]
        # pos*relu(x) - neg*relu(-x)  ==  where(x >= 0, pos, neg) * x
        # (3 VALU ops per vreg; kernel is purely HBM-bandwidth bound.)
        o_ref[...] = (jnp.where(x >= 0, pos, neg) * x).astype(o_ref.dtype)

    return kernel


def _pick_tiles(rows, hw, itemsize, target_block_bytes):
    """Pick (tr, tl) tile sizes for a (rows, hw) slab.

    tr is a multiple of the sublane-packing quantum (8 f32 / 16 bf16 / 32 int8)
    or equal to `rows`; tl is a multiple of 128 or equal to `hw`.
    """
    row_mult = max(8, 32 // max(itemsize, 1))
    row_bytes = hw * itemsize

    if row_mult * row_bytes > target_block_bytes:
        # Very wide rows: tile the lane axis so double-buffered in+out blocks
        # stay inside the VMEM budget (and we get >=2 grid steps).
        tr = rows if rows < row_mult else row_mult
        tl = max(128, (target_block_bytes // (row_mult * itemsize)) // 128 * 128)
        return tr, tl

    # Full-width rows fit: pick the tallest row tile within the budget.
    tl = hw
    tr = max(row_mult, (target_block_bytes // max(row_bytes, 1)) // row_mult * row_mult)
    if rows <= tr:
        total_bytes = rows * row_bytes
        if rows > row_mult and total_bytes > (1 << 20):
            # Large tensor that would otherwise be a single block: split the
            # row axis so v7x megacore can shard it across both TensorCores.
            half = pl.cdiv(rows, 2)
            tr = pl.cdiv(half, row_mult) * row_mult
        else:
            tr = rows
    return tr, tl


def maxout_forward(x_nchw, pos_scale, neg_scale, *, target_block_bytes=6 << 20):
    """x_nchw: (N, C, H, W); pos_scale, neg_scale: (C,). Returns (N, C, H, W)."""
    N, C, H, W = x_nchw.shape
    dtype = x_nchw.dtype
    HW = H * W
    rows = N * C

    # NCHW-native 2D view (pure reshape -- no transpose, no extra HBM traffic).
    # NOTE: if HW is not a multiple of 128 (e.g. 7x7 maps) the lane axis is
    # padded by the hardware layout; padding H*W upstream enables the fully
    # lane-dense fast path.
    x2d = x_nchw.reshape(rows, HW)

    itemsize = jnp.dtype(dtype).itemsize
    tr, tl = _pick_tiles(rows, HW, itemsize, target_block_bytes)
    num_row_blocks = pl.cdiv(rows, tr)
    num_lane_blocks = pl.cdiv(HW, tl)
    grid = (num_row_blocks, num_lane_blocks)

    # Per-row scales in float32 (parameters stay f32, matching PyTorch).
    # Row r = n*C + c uses channel c = r % C.
    pos_rows = jnp.tile(pos_scale.astype(jnp.float32), N).reshape(rows, 1)
    neg_rows = jnp.tile(neg_scale.astype(jnp.float32), N).reshape(rows, 1)

    padded_rows = num_row_blocks * tr
    # Keep scales resident in VMEM (one DMA, reused every step) unless N*C is
    # so large that the on-chip (rows,1)->(rows,128-lane) padding wastes VMEM.
    resident = padded_rows * 128 * 4 <= (2 << 20)
    if resident:
        if padded_rows != rows:
            pad = ((0, padded_rows - rows), (0, 0))
            pos_rows = jnp.pad(pos_rows, pad)
            neg_rows = jnp.pad(neg_rows, pad)
        scale_spec = pl.BlockSpec((padded_rows, 1), lambda i, j: (0, 0))
    else:
        scale_spec = pl.BlockSpec((tr, 1), lambda i, j: (i, 0))

    kernel = _make_maxout_kernel(tr, resident)

    out2d = pl.pallas_call(
        kernel,
        out_shape=jax.ShapeDtypeStruct((rows, HW), dtype),
        grid_spec=pltpu.PrefetchScalarGridSpec(
            num_scalar_prefetch=0,
            grid=grid,
            in_specs=[
                pl.BlockSpec((tr, tl), lambda i, j: (i, j)),
                scale_spec,
                scale_spec,
            ],
            out_specs=pl.BlockSpec((tr, tl), lambda i, j: (i, j)),
        ),
        compiler_params=pltpu.CompilerParams(
            dimension_semantics=("parallel", "parallel"),  # megacore on v7x
            vmem_limit_bytes=48 * 1024 * 1024,  # 2x(6 MiB in + 6 MiB out) + scales << 48 MiB
        ),
    )(x2d, pos_rows, neg_rows)

    return out2d.reshape(N, C, H, W)


if __name__ == "__main__":
    key = jax.random.PRNGKey(0)
    N, C, H, W = 2, 4, 16, 16

    x = jax.random.normal(key, (N, C, H, W), dtype=jnp.float32)

    # Deterministic parameter init, matching Maxout.__init__(channel=C):
    neg_scale = 0.25 * jnp.ones((C,), dtype=jnp.float32)
    pos_scale = 1.0 * jnp.ones((C,), dtype=jnp.float32)

    out = maxout_forward(x, pos_scale, neg_scale)
    out = jax.block_until_ready(out)

    # Pure-JAX reference check (same semantics as the PyTorch module).
    ref = (pos_scale.reshape(1, C, 1, 1) * jnp.maximum(x, 0.0)
           - neg_scale.reshape(1, C, 1, 1) * jnp.maximum(-x, 0.0))
    assert out.shape == (N, C, H, W)
    assert jnp.allclose(out, ref, atol=1e-6), "mismatch vs reference"

    print("KERNEL_OK")
</pallas_src>

<mosaic_0001>
module attributes {stable_mosaic.version = 11 : i64} {
  func.func @kernel(%arg0: i32, %arg1: i32, %arg2: memref<8x256xf32, #tpu.memory_space<vmem>>, %arg3: memref<8x1xf32, #tpu.memory_space<vmem>>, %arg4: memref<8x1xf32, #tpu.memory_space<vmem>>, %arg5: memref<8x256xf32, #tpu.memory_space<vmem>>) attributes {dimension_semantics = [#tpu.dimension_semantics<parallel>, #tpu.dimension_semantics<parallel>], iteration_bounds = array<i64: 1, 1>, scalar_prefetch = 0 : i64, scratch_operands = 0 : i64, tpu.core_type = #tpu.core_type<tc>, window_params = [{transform_indices = @transform_0, window_bounds = array<i64: 8, 256>}, {pipeline_mode = #tpu.pipeline_mode<synchronous>, transform_indices = @transform_1, window_bounds = array<i64: 8, 1>}, {pipeline_mode = #tpu.pipeline_mode<synchronous>, transform_indices = @transform_2, window_bounds = array<i64: 8, 1>}, {transform_indices = @transform_3, window_bounds = array<i64: 8, 256>}]} {
    %c0 = arith.constant 0 : index
    %c0_0 = arith.constant 0 : index
    %0 = vector.load %arg2[%c0, %c0_0] : memref<8x256xf32, #tpu.memory_space<vmem>>, vector<8x256xf32>
    %c8_i32 = arith.constant 8 : i32
    %1 = arith.muli %arg0, %c8_i32 : i32
    %2 = tpu.assume_multiple %1, 8 : i32
    %3 = arith.index_cast %2 : i32 to index
    %c0_1 = arith.constant 0 : index
    %4 = vector.load %arg3[%3, %c0_1] : memref<8x1xf32, #tpu.memory_space<vmem>>, vector<8x1xf32>
    %5 = arith.index_cast %2 : i32 to index
    %c0_2 = arith.constant 0 : index
    %6 = vector.load %arg4[%5, %c0_2] : memref<8x1xf32, #tpu.memory_space<vmem>>, vector<8x1xf32>
    %cst = arith.constant 0.000000e+00 : f32
    %7 = vector.broadcast %cst : f32 to vector<8x256xf32>
    %8 = arith.cmpf oge, %0, %7 : vector<8x256xf32>
    %9 = vector.shape_cast %4 : vector<8x1xf32> to vector<8x1xf32>
    %10 = vector.broadcast %9 : vector<8x1xf32> to vector<8x256xf32>
    %11 = vector.shape_cast %6 : vector<8x1xf32> to vector<8x1xf32>
    %12 = vector.broadcast %11 : vector<8x1xf32> to vector<8x256xf32>
    %13 = arith.select %8, %10, %12 : vector<8x256xi1>, vector<8x256xf32>
    %14 = arith.mulf %13, %0 : vector<8x256xf32>
    %c0_3 = arith.constant 0 : index
    %c0_4 = arith.constant 0 : index
    %15 = vector.load %arg5[%c0_3, %c0_4] : memref<8x256xf32, #tpu.memory_space<vmem>>, vector<8x256xf32>
    tpu.vector_store %arg5[%c0_3, %c0_4], %14 {strides = array<i32>} : memref<8x256xf32, #tpu.memory_space<vmem>>, vector<8x256xf32>,
    return
  }
  func.func @transform_0(%arg0: i32, %arg1: i32) -> (i32, i32) {
    %c0_i32 = arith.constant 0 : i32
    return %arg0, %arg1 : i32, i32
  }
  func.func @transform_1(%arg0: i32, %arg1: i32) -> (i32, i32) {
    %c0_i32 = arith.constant 0 : i32
    %c0_i32_0 = arith.constant 0 : i32
    %c0_i32_1 = arith.constant 0 : i32
    return %c0_i32, %c0_i32_0 : i32, i32
  }
  func.func @transform_2(%arg0: i32, %arg1: i32) -> (i32, i32) {
    %c0_i32 = arith.constant 0 : i32
    %c0_i32_0 = arith.constant 0 : i32
    %c0_i32_1 = arith.constant 0 : i32
    return %c0_i32, %c0_i32_0 : i32, i32
  }
  func.func @transform_3(%arg0: i32, %arg1: i32) -> (i32, i32) {
    %c0_i32 = arith.constant 0 : i32
    return %arg0, %arg1 : i32, i32
  }
}

</mosaic_0001>

<bundles_post_ra>
// kernel: tpu_custom_call.1
= control target key start
LH: loop header
LB: loop body
LE: loop exit
PB: predicated region body
PF: predicated region fallthrough
CT: control target
= control target key end

     0   :  { %s122_s0 = inlined_call_operand.vmem [shape: f32[8,256], index: 0, kind: input, shape index: {}]   ;;  %s123_s1 = inlined_call_operand.vmem [shape: f32[8,1], index: 1, kind: input, shape index: {}]   ;;  %s124_s2 = inlined_call_operand.vmem [shape: f32[8,1], index: 2, kind: input, shape index: {}]   ;;  %s125_s3 = inlined_call_operand.hbm [shape: f32[8,256], index: 3, kind: output, shape index: {}]  }
   0x1   :  { %v19_v0 = vld [vmem:[%s123_s1] sm:$0xff] }
   0x2   :  { %8 = vsyncpa [#allocation3], 0  ;;  %v85_v1 = vmov 0   ;;  %v21_v2 = vld [vmem:[%s124_s2] sm:$0xff]  ;;  %v16_v5 = vld [vmem:[%s122_s0 + $0x8] sm:$0xff]  ;;  %s86_s1 = smov [#allocation2]  }
   0x3   :  { %58 = vset.pattern.permute.xlu0 %v85_v1  ;;  %v15_v4 = vld [vmem:[%s122_s0] sm:$0xff]  ;;  %vm23_vm1 = vcmp.ge.f32.partialorder %v16_v5, 0.0  ;;  %s45_s20 = sshll.u32 %s86_s1, 4  ;;  %s47_s23 = sshll.u32 %s125_s3, 4  ;;  %s46_s20 = int_to_ptr.vmem [resolvable:$true] %s45_s20  ;;  %s48_s23 = int_to_ptr.hbm [resolvable:$true] %s47_s23 }
   0x4   :  { %26 = vperm.xlu0 %58, %v19_v0   ;;  %vm22_vm0 = vcmp.ge.f32.partialorder %v15_v4, 0.0 }
   0xc   :  { %31 = vperm.xlu0 %58, %v21_v2  }
  0x76   :  { %v27_v3 = vpop.permute.xlu0 %26 }
  0x7e   :  { %v32_v6 = vpop.permute.xlu0 %31 }
  0x7f   :  { %v34_v7 = vsel %vm22_vm0, %v27_v3, %v32_v6  ;;  %v35_v8 = vsel %vm23_vm1, %v27_v3, %v32_v6 }
  0x80   :  { %v36_v9 = vmul.f32 %v34_v7, %v15_v4  ;;  %v37_v10 = vmul.f32 %v35_v8, %v16_v5 }
  0x82   :  { %38 = vst [vmem:[#allocation2] sm:$0xff] %v36_v9 }
  0x83   :  { %39 = vst [vmem:[#allocation2 + $0x8] sm:$0xff] %v37_v10 }
  0x84   :  { %50 = dma.vmem_to_hbm [thread:$0]  %s46_s20, 256, %s48_s23, [#allocation3]  }
  0x85   :  { %83 = dma.done.wait [#allocation3], 256  }
  0x86   :  { %84 = vsyncadd [#allocation3], 4294967040 }
  0x87   :  { %55 = vsyncpa [#allocation3], 1 }

</bundles_post_ra>
